<compile_context>
chip_gen: v6e
topology: v6e:2x2x1
jax: 0.10.0
libtpu: 0.0.40
codegen_flags: <defaults>
</compile_context>

<pallas_src>
import jax
import jax.numpy as jnp
from jax.experimental import pallas as pl
from jax.experimental.pallas import tpu as pltpu

NC_PAD = 128  # lane-dense padded class dimension


def _round_up(a, m):
    return -(-a // m) * m


def _mlp_kernel(x_ref, w1_ref, b1_ref, w2_ref, b2_ref, w3_ref, b3_ref, o_ref):
    # Cast activations to bf16 in VMEM (VPU cast is free; saves HBM traffic).
    x = x_ref[...].astype(w1_ref.dtype)

    # Layer 1: Linear(784 -> 256) + ReLU   (Dropout(0.1) identity in eval)
    h1 = jnp.dot(x, w1_ref[...], preferred_element_type=jnp.float32)
    h1 = jnp.maximum(h1 + b1_ref[...], 0.0)

    # Layer 2: Linear(256 -> 256) + ReLU   (Dropout(0.3) identity in eval)
    h2 = jnp.dot(h1.astype(w2_ref.dtype), w2_ref[...],
                 preferred_element_type=jnp.float32)
    h2 = jnp.maximum(h2 + b2_ref[...], 0.0)

    # Layer 3: Linear(256 -> 128 padded; real classes live in lanes [0:3])
    out = jnp.dot(h2.astype(w3_ref.dtype), w3_ref[...],
                  preferred_element_type=jnp.float32)
    o_ref[...] = (out + b3_ref[...]).astype(o_ref.dtype)


def prepare_params(params):
    """One-time (model-load-time) weight prep: bf16 cast + pad classes to 128.

    Keeps the per-inference path free of weight-reformatting XLA ops.
    """
    w1, b1, w2, b2, w3, b3 = params
    num_classes = w3.shape[1]
    w3p = jnp.zeros((w3.shape[0], NC_PAD), w3.dtype).at[:, :num_classes].set(w3)
    b3p = jnp.zeros((1, NC_PAD), b3.dtype).at[:, :num_classes].set(b3)
    prepared = (
        w1.astype(jnp.bfloat16), b1.astype(jnp.float32),
        w2.astype(jnp.bfloat16), b2.astype(jnp.float32),
        w3p.astype(jnp.bfloat16), b3p.astype(jnp.float32),
    )
    return jax.tree_util.tree_map(jax.block_until_ready, prepared), num_classes


def fruit_classifier_forward(x_nchw, prepared_params, num_classes=3):
    """x_nchw: (B, 1, 28, 28) float32. Returns logits of shape (B, num_classes)."""
    w1b, b1, w2b, b2, w3b, b3p = prepared_params
    B = x_nchw.shape[0]

    # Flatten only (pure view-level glue); x stays f32 — cast happens in-kernel.
    x = x_nchw.reshape(B, -1)
    D = x.shape[1]              # 784
    H = w1b.shape[1]            # 256

    # Batch tiling:
    #  * large B: TB multiple of 256, capped at 1024, and chosen so the grid has
    #    >= 2 steps (lets the "parallel" axis shard across both v7x TCs).
    #  * small B: single step, TB rounded up to a multiple of 16 (bf16 sublanes).
    if B >= 512:
        TB = max(256, min(1024, _round_up(pl.cdiv(B, 2), 256)))
    else:
        TB = _round_up(B, 16)
    Bp = _round_up(B, TB)
    if Bp != B:
        x = jnp.pad(x, ((0, Bp - B), (0, 0)))

    # Weights/biases stay VMEM-resident across batch tiles.
    def resident(arr):
        nd = arr.ndim
        return pl.BlockSpec(arr.shape, lambda i: (0,) * nd)

    flops = 2 * Bp * (D * H + H * H + H * NC_PAD)
    bytes_accessed = (
        x.size * 4                                   # f32 activations in
        + (w1b.size + w2b.size + w3b.size) * 2       # bf16 weights
        + (b1.size + b2.size + b3p.size) * 4         # f32 biases
        + Bp * NC_PAD * 2                            # bf16 logits out
    )

    out_padded = pl.pallas_call(
        _mlp_kernel,
        out_shape=jax.ShapeDtypeStruct((Bp, NC_PAD), jnp.bfloat16),
        grid=(Bp // TB,),
        in_specs=[
            pl.BlockSpec((TB, D), lambda i: (i, 0)),   # x: only batch axis tiled
            resident(w1b), resident(b1),
            resident(w2b), resident(b2),
            resident(w3b), resident(b3p),
        ],
        out_specs=pl.BlockSpec((TB, NC_PAD), lambda i: (i, 0)),
        compiler_params=pltpu.CompilerParams(
            dimension_semantics=("parallel",),
            vmem_limit_bytes=32 << 20,
        ),
        cost_estimate=pl.CostEstimate(
            flops=flops, transcendentals=0, bytes_accessed=bytes_accessed),
    )(x, w1b, b1, w2b, b2, w3b, b3p)

    return out_padded[:B, :num_classes].astype(jnp.float32)


def init_params(key, input_size=784, hidden_size=256, num_classes=3):
    """Deterministic init mimicking PyTorch nn.Linear default (U[-1/sqrt(fan_in), +])."""
    keys = jax.random.split(key, 6)

    def linear(kw, kb, fan_in, fan_out):
        bound = 1.0 / jnp.sqrt(fan_in)
        # stored transposed: (in, out) so the kernel does x @ W
        w = jax.random.uniform(kw, (fan_in, fan_out), jnp.float32, -bound, bound)
        b = jax.random.uniform(kb, (1, fan_out), jnp.float32, -bound, bound)
        return w, b

    w1, b1 = linear(keys[0], keys[1], input_size, hidden_size)
    w2, b2 = linear(keys[2], keys[3], hidden_size, hidden_size)
    w3, b3 = linear(keys[4], keys[5], hidden_size, num_classes)
    return (w1, b1, w2, b2, w3, b3)


if __name__ == "__main__":
    key = jax.random.PRNGKey(0)
    k_x, k_p = jax.random.split(key)

    B = 8
    x = jax.random.normal(k_x, (B, 1, 28, 28), dtype=jnp.float32)  # NCHW -> 784
    params = init_params(k_p)

    prepared, num_classes = prepare_params(params)  # one-time weight prep
    logits = fruit_classifier_forward(x, prepared, num_classes)
    jax.block_until_ready(logits)
    assert logits.shape == (B, 3)

    # Reference matching the kernel's numeric path (bf16 inputs/weights, f32
    # accumulation, bf16 final store).
    w1, b1, w2, b2, w3, b3 = params
    xf = x.reshape(B, -1)
    h1 = jnp.maximum(
        jnp.dot(xf.astype(jnp.bfloat16), w1.astype(jnp.bfloat16),
                preferred_element_type=jnp.float32) + b1, 0.0)
    h2 = jnp.maximum(
        jnp.dot(h1.astype(jnp.bfloat16), w2.astype(jnp.bfloat16),
                preferred_element_type=jnp.float32) + b2, 0.0)
    ref_bf16 = (jnp.dot(h2.astype(jnp.bfloat16), w3.astype(jnp.bfloat16),
                        preferred_element_type=jnp.float32) + b3
                ).astype(jnp.bfloat16).astype(jnp.float32)
    assert jnp.allclose(logits, ref_bf16, atol=3e-2, rtol=3e-2)

    # Looser sanity check against the pure f32 reference (bf16 rounding only).
    ref_f32 = jnp.maximum(xf @ w1 + b1, 0.0)
    ref_f32 = jnp.maximum(ref_f32 @ w2 + b2, 0.0)
    ref_f32 = ref_f32 @ w3 + b3
    assert jnp.allclose(logits, ref_f32, atol=1e-1, rtol=1e-1)

    print("KERNEL_OK")
</pallas_src>

<mosaic_0001>
module attributes {stable_mosaic.version = 11 : i64} {
  func.func @_mlp_kernel(%arg0: i32, %arg1: memref<16x784xf32, #tpu.memory_space<vmem>>, %arg2: memref<784x256xbf16, #tpu.memory_space<vmem>>, %arg3: memref<1x256xf32, #tpu.memory_space<vmem>>, %arg4: memref<256x256xbf16, #tpu.memory_space<vmem>>, %arg5: memref<1x256xf32, #tpu.memory_space<vmem>>, %arg6: memref<256x128xbf16, #tpu.memory_space<vmem>>, %arg7: memref<1x128xf32, #tpu.memory_space<vmem>>, %arg8: memref<16x128xbf16, #tpu.memory_space<vmem>>) attributes {dimension_semantics = [#tpu.dimension_semantics<parallel>], iteration_bounds = array<i64: 1>, scalar_prefetch = 0 : i64, scratch_operands = 0 : i64, tpu.core_type = #tpu.core_type<tc>, window_params = [{transform_indices = @transform_0, window_bounds = array<i64: 16, 784>}, {pipeline_mode = #tpu.pipeline_mode<synchronous>, transform_indices = @transform_1, window_bounds = array<i64: 784, 256>}, {pipeline_mode = #tpu.pipeline_mode<synchronous>, transform_indices = @transform_2, window_bounds = array<i64: 1, 256>}, {pipeline_mode = #tpu.pipeline_mode<synchronous>, transform_indices = @transform_3, window_bounds = array<i64: 256, 256>}, {pipeline_mode = #tpu.pipeline_mode<synchronous>, transform_indices = @transform_4, window_bounds = array<i64: 1, 256>}, {pipeline_mode = #tpu.pipeline_mode<synchronous>, transform_indices = @transform_5, window_bounds = array<i64: 256, 128>}, {pipeline_mode = #tpu.pipeline_mode<synchronous>, transform_indices = @transform_6, window_bounds = array<i64: 1, 128>}, {transform_indices = @transform_7, window_bounds = array<i64: 16, 128>}]} {
    %c0 = arith.constant 0 : index
    %c0_0 = arith.constant 0 : index
    %0 = vector.load %arg1[%c0, %c0_0] : memref<16x784xf32, #tpu.memory_space<vmem>>, vector<16x784xf32>
    %1 = arith.truncf %0 : vector<16x784xf32> to vector<16x784xbf16>
    %c0_1 = arith.constant 0 : index
    %c0_2 = arith.constant 0 : index
    %2 = vector.load %arg2[%c0_1, %c0_2] : memref<784x256xbf16, #tpu.memory_space<vmem>>, vector<784x256xbf16>
    %cst = arith.constant dense<0.000000e+00> : vector<16x256xf32>
    %3 = tpu.matmul %1, %2, %cst {dimension_numbers = #tpu.dot_dimension_numbers<[1], [0], [0], [1], [0, 0, 1, 1], [], []>} : vector<16x784xbf16>, vector<784x256xbf16>, vector<16x256xf32> -> vector<16x256xf32>
    %c0_3 = arith.constant 0 : index
    %c0_4 = arith.constant 0 : index
    %4 = vector.load %arg3[%c0_3, %c0_4] : memref<1x256xf32, #tpu.memory_space<vmem>>, vector<1x256xf32>
    %5 = vector.broadcast %4 : vector<1x256xf32> to vector<16x256xf32>
    %6 = arith.addf %3, %5 : vector<16x256xf32>
    %cst_5 = arith.constant 0.000000e+00 : f32
    %7 = vector.broadcast %cst_5 : f32 to vector<16x256xf32>
    %8 = arith.maximumf %6, %7 : vector<16x256xf32>
    %9 = arith.truncf %8 : vector<16x256xf32> to vector<16x256xbf16>
    %c0_6 = arith.constant 0 : index
    %c0_7 = arith.constant 0 : index
    %10 = vector.load %arg4[%c0_6, %c0_7] : memref<256x256xbf16, #tpu.memory_space<vmem>>, vector<256x256xbf16>
    %cst_8 = arith.constant dense<0.000000e+00> : vector<16x256xf32>
    %11 = tpu.matmul %9, %10, %cst_8 {dimension_numbers = #tpu.dot_dimension_numbers<[1], [0], [0], [1], [0, 0, 1, 1], [], []>} : vector<16x256xbf16>, vector<256x256xbf16>, vector<16x256xf32> -> vector<16x256xf32>
    %c0_9 = arith.constant 0 : index
    %c0_10 = arith.constant 0 : index
    %12 = vector.load %arg5[%c0_9, %c0_10] : memref<1x256xf32, #tpu.memory_space<vmem>>, vector<1x256xf32>
    %13 = vector.broadcast %12 : vector<1x256xf32> to vector<16x256xf32>
    %14 = arith.addf %11, %13 : vector<16x256xf32>
    %cst_11 = arith.constant 0.000000e+00 : f32
    %15 = vector.broadcast %cst_11 : f32 to vector<16x256xf32>
    %16 = arith.maximumf %14, %15 : vector<16x256xf32>
    %17 = arith.truncf %16 : vector<16x256xf32> to vector<16x256xbf16>
    %c0_12 = arith.constant 0 : index
    %c0_13 = arith.constant 0 : index
    %18 = vector.load %arg6[%c0_12, %c0_13] : memref<256x128xbf16, #tpu.memory_space<vmem>>, vector<256x128xbf16>
    %cst_14 = arith.constant dense<0.000000e+00> : vector<16x128xf32>
    %19 = tpu.matmul %17, %18, %cst_14 {dimension_numbers = #tpu.dot_dimension_numbers<[1], [0], [0], [1], [0, 0, 1, 1], [], []>} : vector<16x256xbf16>, vector<256x128xbf16>, vector<16x128xf32> -> vector<16x128xf32>
    %c0_15 = arith.constant 0 : index
    %c0_16 = arith.constant 0 : index
    %20 = vector.load %arg7[%c0_15, %c0_16] : memref<1x128xf32, #tpu.memory_space<vmem>>, vector<1x128xf32>
    %21 = vector.broadcast %20 : vector<1x128xf32> to vector<16x128xf32>
    %22 = arith.addf %19, %21 : vector<16x128xf32>
    %23 = arith.truncf %22 : vector<16x128xf32> to vector<16x128xbf16>
    %c0_17 = arith.constant 0 : index
    %c0_18 = arith.constant 0 : index
    %24 = vector.load %arg8[%c0_17, %c0_18] : memref<16x128xbf16, #tpu.memory_space<vmem>>, vector<16x128xbf16>
    tpu.vector_store %arg8[%c0_17, %c0_18], %23 {strides = array<i32>} : memref<16x128xbf16, #tpu.memory_space<vmem>>, vector<16x128xbf16>,
    return
  }
  func.func @transform_0(%arg0: i32) -> (i32, i32) {
    %c0_i32 = arith.constant 0 : i32
    %c0_i32_0 = arith.constant 0 : i32
    return %arg0, %c0_i32 : i32, i32
  }
  func.func @transform_1(%arg0: i32) -> (i32, i32) {
    %c0_i32 = arith.constant 0 : i32
    %c0_i32_0 = arith.constant 0 : i32
    %c0_i32_1 = arith.constant 0 : i32
    return %c0_i32, %c0_i32_0 : i32, i32
  }
  func.func @transform_2(%arg0: i32) -> (i32, i32) {
    %c0_i32 = arith.constant 0 : i32
    %c0_i32_0 = arith.constant 0 : i32
    %c0_i32_1 = arith.constant 0 : i32
    return %c0_i32, %c0_i32_0 : i32, i32
  }
  func.func @transform_3(%arg0: i32) -> (i32, i32) {
    %c0_i32 = arith.constant 0 : i32
    %c0_i32_0 = arith.constant 0 : i32
    %c0_i32_1 = arith.constant 0 : i32
    return %c0_i32, %c0_i32_0 : i32, i32
  }
  func.func @transform_4(%arg0: i32) -> (i32, i32) {
    %c0_i32 = arith.constant 0 : i32
    %c0_i32_0 = arith.constant 0 : i32
    %c0_i32_1 = arith.constant 0 : i32
    return %c0_i32, %c0_i32_0 : i32, i32
  }
  func.func @transform_5(%arg0: i32) -> (i32, i32) {
    %c0_i32 = arith.constant 0 : i32
    %c0_i32_0 = arith.constant 0 : i32
    %c0_i32_1 = arith.constant 0 : i32
    return %c0_i32, %c0_i32_0 : i32, i32
  }
  func.func @transform_6(%arg0: i32) -> (i32, i32) {
    %c0_i32 = arith.constant 0 : i32
    %c0_i32_0 = arith.constant 0 : i32
    %c0_i32_1 = arith.constant 0 : i32
    return %c0_i32, %c0_i32_0 : i32, i32
  }
  func.func @transform_7(%arg0: i32) -> (i32, i32) {
    %c0_i32 = arith.constant 0 : i32
    %c0_i32_0 = arith.constant 0 : i32
    return %arg0, %c0_i32 : i32, i32
  }
}

</mosaic_0001>

<bundles_post_ra>
// kernel: tpu_custom_call.1
= control target key start
LH: loop header
LB: loop body
LE: loop exit
PB: predicated region body
PF: predicated region fallthrough
CT: control target
= control target key end

     0   :  { %12 = vsyncpa [#allocation3], 0  ;;  %s1942_s0 = inlined_call_operand.hbm [shape: f32[16,784], index: 0, kind: input, shape index: {}]   ;;  %s1943_s1 = inlined_call_operand.hbm [shape: bf16[784,256], index: 1, kind: input, shape index: {}]   ;;  %s1944_s2 = inlined_call_operand.vmem [shape: f32[1,256], index: 2, kind: input, shape index: {}]   ;;  %s1945_s3 = inlined_call_operand.hbm [shape: bf16[256,256], index: 3, kind: input, shape index: {}]   ;;  %s1946_s4 = inlined_call_operand.vmem [shape: f32[1,256], index: 4, kind: input, shape index: {}]   ;;  %s1947_s5 = inlined_call_operand.hbm [shape: bf16[256,128], index: 5, kind: input, shape index: {}]   ;;  %s1948_s6 = inlined_call_operand.vmem [shape: f32[1,128], index: 6, kind: input, shape index: {}]   ;;  %s1949_s7 = inlined_call_operand.hbm [shape: bf16[16,128], index: 7, kind: output, shape index: {}]  }
   0x1   :  { %13 = vsyncpa [#allocation6], 0 }
   0x2   :  { %14 = vsyncpa [#allocation9], 0 }
   0x3   :  { %15 = vsyncpa [#allocation4], 0  ;;  %s1854_s24 = smov [#allocation5]  }
   0x4   :  { %s33_s25 = sshll.u32 %s1854_s24, 4  ;;  %s34_s25 = int_to_ptr.vmem [resolvable:$true] %s33_s25 }
   0x5   :  { %s1754_s26 = scalar_lea.vmem %s34_s25, 12544  ;;  %p1759_p1 = scmp.lt.s32.totalorder %s34_s25, %s34_s25 }
   0x6   :  { %p1755_p0 = scmp.ne.s32.totalorder %s34_s25, %s1754_s26  ;;  %p1760_p2 = scmp.lt.s32.totalorder %s1754_s26, %s1754_s26 }
   0x8   :  { %p1761_p3 = por %p1760_p2, %p1759_p1 }
   0xa   :  { %p1762_p4 = pnand %p1761_p3, %p1755_p0 }
   0xc   :  { %1765 = shalt.err (!%p1762_p4)
}
   0xd   :  { %s1855_s27 = smov 128   ;;  %s1856_s28 = smov 8  }
   0xe   :  { %39 = dma.hbm_to_vmem [thread:$0]  %s1943_s1, 12544, %s34_s25, [#allocation6], %s1855_s27, %s1855_s27, %s1856_s28  }
   0xf   :  { %s1857_s8 = smov [#allocation2]  }
  0x10   :  { %s21_s9 = sshll.u32 %s1857_s8, 4  ;;  %s22_s9 = int_to_ptr.vmem [resolvable:$true] %s21_s9 }
  0x11   :  { %s1774_s10 = scalar_lea.vmem %s22_s9, 1792  ;;  %p1779_p6 = scmp.lt.s32.totalorder %s22_s9, %s22_s9 }
  0x12   :  { %p1775_p5 = scmp.ne.s32.totalorder %s22_s9, %s1774_s10  ;;  %p1780_p7 = scmp.lt.s32.totalorder %s1774_s10, %s1774_s10 }
  0x14   :  { %p1781_p8 = por %p1780_p7, %p1779_p6 }
  0x16   :  { %p1782_p9 = pnand %p1781_p8, %p1775_p5 }
  0x18   :  { %1785 = shalt.err (!%p1782_p9)
}
  0x19   :  { %s1858_s11 = smov 896   ;;  %s1859_s12 = smov 56  }
  0x1a   :  { %27 = dma.hbm_to_vmem [thread:$0]  %s1942_s0, 1792, %s22_s9, [#allocation3], %s1858_s11, %s1858_s11, %s1859_s12  }
  0x1b   :  { %s1860_s15 = smov [#allocation7]   ;;  %s1861_s17 = smov [#allocation8]  }
  0x1c   :  { %s47_s16 = sshll.u32 %s1860_s15, 4  ;;  %s61_s1 = sshll.u32 %s1861_s17, 4  ;;  %s48_s16 = int_to_ptr.vmem [resolvable:$true] %s47_s16  ;;  %s62_s1 = int_to_ptr.vmem [resolvable:$true] %s61_s1 }
  0x1d   :  { %s1794_s18 = scalar_lea.vmem %s48_s16, 4096  ;;  %p1799_p11 = scmp.lt.s32.totalorder %s48_s16, %s48_s16 }
  0x1e   :  { %p1795_p10 = scmp.ne.s32.totalorder %s48_s16, %s1794_s18  ;;  %p1800_p12 = scmp.lt.s32.totalorder %s1794_s18, %s1794_s18 }
  0x20   :  { %p1801_p13 = por %p1800_p12, %p1799_p11 }
  0x22   :  { %p1802_p0 = pnand %p1801_p13, %p1795_p10 }
  0x24   :  { %1805 = shalt.err (!%p1802_p0)
}
  0x25   :  { %53 = dma.hbm_to_vmem [thread:$0]  %s1945_s3, 4096, %s48_s16, [#allocation6], %s1855_s27, %s1855_s27, %s1856_s28  }
  0x26   :  { %s1814_s0 = scalar_lea.vmem %s62_s1, 2048  ;;  %p1819_p2 = scmp.lt.s32.totalorder %s62_s1, %s62_s1 }
  0x27   :  { %p1815_p1 = scmp.ne.s32.totalorder %s62_s1, %s1814_s0  ;;  %p1820_p3 = scmp.lt.s32.totalorder %s1814_s0, %s1814_s0 }
  0x29   :  { %p1821_p4 = por %p1820_p3, %p1819_p2 }
  0x2b   :  { %p1822_p5 = pnand %p1821_p4, %p1815_p1 }
  0x2d   :  { %1825 = shalt.err (!%p1822_p5)
}
  0x2e   :  { %s1862_s21 = smov 64   ;;  %s1863_s22 = smov 4  }
  0x2f   :  { %67 = dma.hbm_to_vmem [thread:$0]  %s1947_s5, 2048, %s62_s1, [#allocation9], %s1862_s21, %s1862_s21, %s1863_s22  }
  0x30   :  { %1846 = dma.done.wait [#allocation3], 1792  }
  0x31   :  { %1847 = vsyncadd [#allocation3], 4294965504 }
  0x32   :  { %1848 = dma.done.wait [#allocation6], 16640  }
  0x33   :  { %1849 = vsyncadd [#allocation6], 4294950656 }
  0x34   :  { %1850 = dma.done.wait [#allocation9], 2048  }
  0x35   :  { %1851 = vsyncadd [#allocation9], 4294965248  ;;  %v1535_v0 = vld [vmem:[#allocation5 + $0x74] ss:$8 sps:$4 sm:$0xff]   ;;  %v1537_v1 = vld [vmem:[#allocation5 + $0x70] ss:$8 sps:$4 sm:$0xff]  }
  0x36   :  { %708 = vmatprep.subr.bf16.mxu0 %v1535_v0  ;;  %v1538_v2 = vld [vmem:[#allocation5 + $0x174] ss:$8 sps:$4 sm:$0xff]   ;;  %v1540_v3 = vld [vmem:[#allocation5 + $0x170] ss:$8 sps:$4 sm:$0xff]   ;;  %v1541_v4 = vld [vmem:[#allocation5 + $0x64] ss:$8 sps:$4 sm:$0xff]  }
  0x37   :  { %709 = vmatpush1.bf16.msra.mxu0 %v1537_v1  ;;  %v1543_v5 = vld [vmem:[#allocation5 + $0x60] ss:$8 sps:$4 sm:$0xff]   ;;  %751 = vmatprep.subr.bf16.mxu1 %v1538_v2  ;;  %v1544_v6 = vld [vmem:[#allocation5 + $0x164] ss:$8 sps:$4 sm:$0xff]   ;;  %v1547_v8 = vld [vmem:[#allocation5 + $0x54] ss:$8 sps:$4 sm:$0xff]  }
  0x38   :  { %752 = vmatpush1.bf16.msra.mxu1 %v1540_v3  ;;  %710 = vmatprep.subr.bf16.mxu0 %v1541_v4  ;;  %v1546_v7 = vld [vmem:[#allocation5 + $0x160] ss:$8 sps:$4 sm:$0xff]   ;;  %v1549_v9 = vld [vmem:[#allocation5 + $0x50] ss:$8 sps:$4 sm:$0xff]   ;;  %v1550_v10 = vld [vmem:[#allocation5 + $0x154] ss:$8 sps:$4 sm:$0xff]  }
  0x39   :  { %753 = vmatprep.subr.bf16.mxu1 %v1544_v6  ;;  %v1553_v11 = vld [vmem:[#allocation5 + $0x44] ss:$8 sps:$4 sm:$0xff]   ;;  %v1552_v12 = vld [vmem:[#allocation5 + $0x150] ss:$8 sps:$4 sm:$0xff]   ;;  %v1555_v14 = vld [vmem:[#allocation5 + $0x40] ss:$8 sps:$4 sm:$0xff]  }
  0x3a   :  { %v1556_v13 = vld [vmem:[#allocation5 + $0x144] ss:$8 sps:$4 sm:$0xff]   ;;  %v1559_v15 = vld [vmem:[#allocation5 + $0x34] ss:$8 sps:$4 sm:$0xff]   ;;  %v1558_v16 = vld [vmem:[#allocation5 + $0x140] ss:$8 sps:$4 sm:$0xff]  }
  0x3b   :  { %711 = vmatpush1.bf16.msra.mxu0 %v1543_v5  ;;  %v1562_v17 = vld [vmem:[#allocation5 + $0x134] ss:$8 sps:$4 sm:$0xff]   ;;  %v1561_v18 = vld [vmem:[#allocation5 + $0x30] ss:$8 sps:$4 sm:$0xff]   ;;  %v1565_v19 = vld [vmem:[#allocation5 + $0x24] ss:$8 sps:$4 sm:$0xff]  }
  0x3c   :  { %712 = vmatprep.subr.bf16.mxu0 %v1547_v8  ;;  %754 = vmatpush1.bf16.msra.mxu1 %v1546_v7  ;;  %v1564_v20 = vld [vmem:[#allocation5 + $0x130] ss:$8 sps:$4 sm:$0xff]   ;;  %v1568_v21 = vld [vmem:[#allocation5 + $0x124] ss:$8 sps:$4 sm:$0xff]   ;;  %v1567_v22 = vld [vmem:[#allocation5 + $0x20] ss:$8 sps:$4 sm:$0xff]  }
  0x3d   :  { %755 = vmatprep.subr.bf16.mxu1 %v1550_v10  ;;  %v1571_v23 = vld [vmem:[#allocation5 + $0x14] ss:$8 sps:$4 sm:$0xff]   ;;  %v1570_v24 = vld [vmem:[#allocation5 + $0x120] ss:$8 sps:$4 sm:$0xff]   ;;  %v1573_v26 = vld [vmem:[#allocation5 + $0x10] ss:$8 sps:$4 sm:$0xff]  }
  0x3e   :  { %v1574_v25 = vld [vmem:[#allocation5 + $0x114] ss:$8 sps:$4 sm:$0xff]   ;;  %v1577_v27 = vld [vmem:[#allocation5 + $0x4] ss:$8 sps:$4 sm:$0xff]   ;;  %v1576_v28 = vld [vmem:[#allocation5 + $0x110] ss:$8 sps:$4 sm:$0xff]  }
  0x3f   :  { %713 = vmatpush1.bf16.msra.mxu0 %v1549_v9  ;;  %v1580_v29 = vld [vmem:[#allocation5 + $0x104] ss:$8 sps:$4 sm:$0xff]   ;;  %v1579_v30 = vld [vmem:[#allocation5] ss:$8 sps:$4 sm:$0xff]   ;;  %v1583_v31 = vld [vmem:[#allocation5 + $0xf4] ss:$8 sps:$4 sm:$0xff]  }
  0x40   :  { %714 = vmatprep.subr.bf16.mxu0 %v1553_v11  ;;  %756 = vmatpush1.bf16.msra.mxu1 %v1552_v12  ;;  %v1582_v32 = vld [vmem:[#allocation5 + $0x100] ss:$8 sps:$4 sm:$0xff]   ;;  %v1586_v33 = vld [vmem:[#allocation5 + $0x1f4] ss:$8 sps:$4 sm:$0xff]   ;;  %v1585_v34 = vld [vmem:[#allocation5 + $0xf0] ss:$8 sps:$4 sm:$0xff]  }
  0x41   :  { %757 = vmatprep.subr.bf16.mxu1 %v1556_v13  ;;  %v1589_v35 = vld [vmem:[#allocation5 + $0xe4] ss:$8 sps:$4 sm:$0xff]   ;;  %v1588_v36 = vld [vmem:[#allocation5 + $0x1f0] ss:$8 sps:$4 sm:$0xff]   ;;  %v1591_v38 = vld [vmem:[#allocation5 + $0xe0] ss:$8 sps:$4 sm:$0xff]  }
  0x42   :  { %v1592_v37 = vld [vmem:[#allocation5 + $0x1e4] ss:$8 sps:$4 sm:$0xff]   ;;  %v1595_v39 = vld [vmem:[#allocation5 + $0xd4] ss:$8 sps:$4 sm:$0xff]   ;;  %v1594_v40 = vld [vmem:[#allocation5 + $0x1e0] ss:$8 sps:$4 sm:$0xff]  }
  0x43   :  { %715 = vmatpush1.bf16.msra.mxu0 %v1555_v14  ;;  %v1598_v41 = vld [vmem:[#allocation5 + $0x1d4] ss:$8 sps:$4 sm:$0xff]   ;;  %v1597_v42 = vld [vmem:[#allocation5 + $0xd0] ss:$8 sps:$4 sm:$0xff]   ;;  %v1601_v43 = vld [vmem:[#allocation5 + $0xc4] ss:$8 sps:$4 sm:$0xff]  }
  0x44   :  { %716 = vmatprep.subr.bf16.mxu0 %v1559_v15  ;;  %758 = vmatpush1.bf16.msra.mxu1 %v1558_v16  ;;  %v1600_v44 = vld [vmem:[#allocation5 + $0x1d0] ss:$8 sps:$4 sm:$0xff]   ;;  %v1604_v45 = vld [vmem:[#allocation5 + $0x1c4] ss:$8 sps:$4 sm:$0xff]   ;;  %v1603_v48 = vld [vmem:[#allocation5 + $0xc0] ss:$8 sps:$4 sm:$0xff]  }
  0x45   :  { %759 = vmatprep.subr.bf16.mxu1 %v1562_v17  ;;  %v84_v46 = vld [vmem:[#allocation2 + $0x8] sm:$0xff]  ;;  %v91_v47 = vld [vmem:[#allocation2 + $0x40] sm:$0xff]  ;;  %v1606_v51 = vld [vmem:[#allocation5 + $0x1c0] ss:$8 sps:$4 sm:$0xff]   ;;  %vm704_vm0 = vcmask 130048   ;;  %s1865_s27 = smov [#allocation10]  }
  0x46   :  { %v98_v49 = vpack.c.bf16 %v91_v47, %v84_v46  ;;  %v1607_v50 = vld [vmem:[#allocation5 + $0xb4] ss:$8 sps:$4 sm:$0xff]   ;;  %v86_v52 = vld [vmem:[#allocation2 + $0x18] sm:$0xff]  ;;  %v93_v53 = vld [vmem:[#allocation2 + $0x50] sm:$0xff]  ;;  %s1330_s28 = sshll.u32 %s1865_s27, 4  ;;  %s1331_s28 = int_to_ptr.vmem [resolvable:$true] %s1330_s28 }
  0x47   :  { %717 = vmatpush1.bf16.msra.mxu0 %v1561_v18  ;;  %v1610_v54 = vld [vmem:[#allocation5 + $0x1b4] ss:$8 sps:$4 sm:$0xff]   ;;  %v100_v55 = vpack.c.bf16 %v93_v53, %v86_v52  ;;  %v1609_v56 = vld [vmem:[#allocation5 + $0xb0] ss:$8 sps:$4 sm:$0xff]   ;;  %v1613_v57 = vld [vmem:[#allocation5 + $0xa4] ss:$8 sps:$4 sm:$0xff]   ;;  %p1831_p7 = scmp.lt.s32.totalorder %s1331_s28, %s1331_s28 }
  0x48   :  { %718 = vmatprep.subr.bf16.mxu0 %v1565_v19  ;;  %760 = vmatpush1.bf16.msra.mxu1 %v1564_v20  ;;  %v1612_v58 = vld [vmem:[#allocation5 + $0x1b0] ss:$8 sps:$4 sm:$0xff]   ;;  %v1616_v59 = vld [vmem:[#allocation5 + $0x1a4] ss:$8 sps:$4 sm:$0xff]   ;;  %v1615_v60 = vld [vmem:[#allocation5 + $0xa0] ss:$8 sps:$4 sm:$0xff]  }
  0x49   :  { %761 = vmatprep.subr.bf16.mxu1 %v1568_v21  ;;  %740 = vmatprep.mubr.bf16.mxu0 %v98_v49  ;;  %v1619_v61 = vld [vmem:[#allocation5 + $0x94] ss:$8 sps:$4 sm:$0xff]   ;;  %v1618_v62 = vld [vmem:[#allocation5 + $0x1a0] ss:$8 sps:$4 sm:$0xff]   ;;  %v1621_v0 = vld [vmem:[#allocation5 + $0x90] ss:$8 sps:$4 sm:$0xff]  }
  0x4a   :  { %783 = vmatprep.mubr.bf16.mxu1 %v100_v55  ;;  %v1622_v63 = vld [vmem:[#allocation5 + $0x194] ss:$8 sps:$4 sm:$0xff]   ;;  %v1624_v1 = vld [vmem:[#allocation5 + $0x190] ss:$8 sps:$4 sm:$0xff]   ;;  %v1625_v2 = vld [vmem:[#allocation5 + $0x84] ss:$8 sps:$4 sm:$0xff]  }
  0x4b   :  { %719 = vmatpush1.bf16.msra.mxu0 %v1567_v22  ;;  %v1627_v3 = vld [vmem:[#allocation5 + $0x80] ss:$8 sps:$4 sm:$0xff]   ;;  %v1628_v4 = vld [vmem:[#allocation5 + $0x184] ss:$8 sps:$4 sm:$0xff]   ;;  %v83_v5 = vld [vmem:[#allocation2] sm:$0xff]  ;;  %v1864_v21 = vmov 0  }
  0x4c   :  { %720 = vmatprep.subr.bf16.mxu0 %v1571_v23  ;;  %762 = vmatpush1.bf16.msra.mxu1 %v1570_v24  ;;  %v1630_v6 = vld [vmem:[#allocation5 + $0x180] ss:$8 sps:$4 sm:$0xff]   ;;  %v1633_v8 = vld [vmem:[#allocation5 + $0x274] ss:$8 sps:$4 sm:$0xff]   ;;  %v1631_v12 = vld [vmem:[#allocation5 + $0x270] ss:$8 sps:$4 sm:$0xff]  }
  0x4d   :  { %763 = vmatprep.subr.bf16.mxu1 %v1574_v25  ;;  %v90_v7 = vld [vmem:[#allocation2 + $0x38] sm:$0xff]  ;;  %v85_v9 = vld [vmem:[#allocation2 + $0x10] sm:$0xff]  ;;  %v92_v10 = vld [vmem:[#allocation2 + $0x48] sm:$0xff]  ;;  %s1826_s29 = scalar_lea.vmem %s1331_s28, 128 }
  0x4e   :  { %v97_v11 = vpack.c.bf16 %v90_v7, %v83_v5  ;;  %v99_v13 = vpack.c.bf16 %v92_v10, %v85_v9  ;;  %v1636_v14 = vld [vmem:[#allocation5 + $0x264] ss:$8 sps:$4 sm:$0xff]   ;;  %v1676_v15 = vld [vmem:[#allocation5 + $0x300] ss:$8 sps:$4 sm:$0xff]   ;;  %v1639_v18 = vld [vmem:[#allocation5 + $0x254] ss:$8 sps:$4 sm:$0xff]   ;;  %p1827_p6 = scmp.ne.s32.totalorder %s1331_s28, %s1826_s29  ;;  %p1832_p8 = scmp.lt.s32.totalorder %s1826_s29, %s1826_s29 }
  0x4f   :  { %721 = vmatpush1.bf16.msra.mxu0 %v1573_v26  ;;  %v1678_v16 = vld [vmem:[#allocation5 + $0x304] ss:$8 sps:$4 sm:$0xff]   ;;  %v1634_v17 = vld [vmem:[#allocation5 + $0x260] ss:$8 sps:$4 sm:$0xff]   ;;  %v88_v19 = vld [vmem:[#allocation2 + $0x28] sm:$0xff] }
  0x50   :  { %722 = vmatprep.subr.bf16.mxu0 %v1577_v27  ;;  %764 = vmatpush1.bf16.msra.mxu1 %v1576_v28  ;;  %v1637_v20 = vld [vmem:[#allocation5 + $0x250] ss:$8 sps:$4 sm:$0xff]   ;;  %v89_v22 = vld [vmem:[#allocation2 + $0x30] sm:$0xff]  ;;  %v1675_v49 = vld [vmem:[#allocation5 + $0x294] ss:$8 sps:$4 sm:$0xff]   ;;  %p1833_p9 = por %p1832_p8, %p1831_p7 }
  0x51   :  { %765 = vmatprep.subr.bf16.mxu1 %v1580_v29  ;;  %v96_v23 = vld [vmem:[#allocation2 + $0x68] sm:$0xff]  ;;  %v95_v24 = vld [vmem:[#allocation2 + $0x60] sm:$0xff]  ;;  %v1642_v25 = vld [vmem:[#allocation5 + $0x244] ss:$8 sps:$4 sm:$0xff]  }
  0x52   :  { %v102_v26 = vpack.c.bf16 %v95_v24, %v88_v19  ;;  %v103_v27 = vpack.c.bf16 %v96_v23, %v89_v22  ;;  %v1640_v28 = vld [vmem:[#allocation5 + $0x240] ss:$8 sps:$4 sm:$0xff]   ;;  %v1645_v29 = vld [vmem:[#allocation5 + $0x234] ss:$8 sps:$4 sm:$0xff]   ;;  %v1667_v46 = vld [vmem:[#allocation5 + $0x2b0] ss:$8 sps:$4 sm:$0xff]   ;;  %p1834_p10 = pnand %p1833_p9, %p1827_p6 }
  0x53   :  { %723 = vmatpush1.bf16.msra.mxu0 %v1579_v30  ;;  %v1643_v30 = vld [vmem:[#allocation5 + $0x230] ss:$8 sps:$4 sm:$0xff]   ;;  %v1672_v47 = vld [vmem:[#allocation5 + $0x2a4] ss:$8 sps:$4 sm:$0xff]   ;;  %v1679_v52 = vld [vmem:[#allocation5 + $0x280] ss:$8 sps:$4 sm:$0xff]  }
  0x54   :  { %724 = vmatprep.subr.bf16.mxu0 %v1583_v31  ;;  %766 = vmatpush1.bf16.msra.mxu1 %v1582_v32  ;;  %v1648_v31 = vld [vmem:[#allocation5 + $0x224] ss:$8 sps:$4 sm:$0xff]   ;;  %v1646_v32 = vld [vmem:[#allocation5 + $0x220] ss:$8 sps:$4 sm:$0xff]   ;;  %v87_v53 = vld [vmem:[#allocation2 + $0x20] sm:$0xff] }
  0x55   :  { %767 = vmatprep.subr.bf16.mxu1 %v1586_v33  ;;  %v1651_v33 = vld [vmem:[#allocation5 + $0x214] ss:$8 sps:$4 sm:$0xff]   ;;  %v1700_v5 = vld [vmem:[#allocation7 + $0x10] ss:$8 sps:$4 sm:$0xff]   ;;  %v1703_v7 = vld [vmem:[#allocation7] ss:$8 sps:$4 sm:$0xff]  }
  0x56   :  { %v1706_v9 = vld [vmem:[#allocation7 + $0xf0] ss:$8 sps:$4 sm:$0xff]   ;;  %v1711_v10 = vld [vmem:[#allocation7 + $0xe4] ss:$8 sps:$4 sm:$0xff]   ;;  %v1721_v19 = vld [vmem:[#allocation7 + $0xa0] ss:$8 sps:$4 sm:$0xff]  }
  0x57   :  { %725 = vmatpush2.bf16.msra.mxu0 %v1585_v34  ;;  %v1649_v34 = vld [vmem:[#allocation5 + $0x210] ss:$8 sps:$4 sm:$0xff]   ;;  %v1729_v22 = vld [vmem:[#allocation7 + $0x84] ss:$8 sps:$4 sm:$0xff]   ;;  %v1730_v24 = vld [vmem:[#allocation8 + $0x78] sm:$0xff]  }
  0x58   :  { %726 = vmatprep.subr.bf16.mxu0 %v1589_v35  ;;  %768 = vmatpush2.bf16.msra.mxu1 %v1588_v36  ;;  %v1654_v35 = vld [vmem:[#allocation5 + $0x204] ss:$8 sps:$4 sm:$0xff]   ;;  %v1652_v36 = vld [vmem:[#allocation5 + $0x200] ss:$8 sps:$4 sm:$0xff]   ;;  %v1727_v23 = vld [vmem:[#allocation7 + $0x80] ss:$8 sps:$4 sm:$0xff]  }
  0x59   :  { %769 = vmatprep.subr.bf16.mxu1 %v1592_v37  ;;  %v1657_v37 = vld [vmem:[#allocation5 + $0x2f4] ss:$8 sps:$4 sm:$0xff]  }
  0x5b   :  { %727 = vmatpush2.bf16.msra.mxu0 %v1591_v38  ;;  %v1655_v38 = vld [vmem:[#allocation5 + $0x2f0] ss:$8 sps:$4 sm:$0xff]  }
  0x5c   :  { %728 = vmatprep.subr.bf16.mxu0 %v1595_v39  ;;  %770 = vmatpush2.bf16.msra.mxu1 %v1594_v40  ;;  %v1660_v39 = vld [vmem:[#allocation5 + $0x2e4] ss:$8 sps:$4 sm:$0xff]   ;;  %v1658_v40 = vld [vmem:[#allocation5 + $0x2e0] ss:$8 sps:$4 sm:$0xff]  }
  0x5d   :  { %771 = vmatprep.subr.bf16.mxu1 %v1598_v41  ;;  %v1663_v41 = vld [vmem:[#allocation5 + $0x2d4] ss:$8 sps:$4 sm:$0xff]  }
  0x5f   :  { %729 = vmatpush2.bf16.msra.mxu0 %v1597_v42  ;;  %v1661_v42 = vld [vmem:[#allocation5 + $0x2d0] ss:$8 sps:$4 sm:$0xff]  }
  0x60   :  { %730 = vmatprep.subr.bf16.mxu0 %v1601_v43  ;;  %772 = vmatpush2.bf16.msra.mxu1 %v1600_v44  ;;  %v1666_v43 = vld [vmem:[#allocation5 + $0x2c4] ss:$8 sps:$4 sm:$0xff]   ;;  %v1664_v44 = vld [vmem:[#allocation5 + $0x2c0] ss:$8 sps:$4 sm:$0xff]  }
  0x61   :  { %773 = vmatprep.subr.bf16.mxu1 %v1604_v45  ;;  %v1669_v45 = vld [vmem:[#allocation5 + $0x2b4] ss:$8 sps:$4 sm:$0xff]  }
  0x63   :  { %731 = vmatpush2.bf16.msra.mxu0 %v1603_v48  ;;  %v1670_v48 = vld [vmem:[#allocation5 + $0x2a0] ss:$8 sps:$4 sm:$0xff]  }
  0x64   :  { %732 = vmatprep.subr.bf16.mxu0 %v1607_v50  ;;  %774 = vmatpush2.bf16.msra.mxu1 %v1606_v51  ;;  %v1673_v50 = vld [vmem:[#allocation5 + $0x290] ss:$8 sps:$4 sm:$0xff]   ;;  %v1681_v51 = vld [vmem:[#allocation5 + $0x284] ss:$8 sps:$4 sm:$0xff]  }
  0x65   :  { %775 = vmatprep.subr.bf16.mxu1 %v1610_v54  ;;  %v94_v54 = vld [vmem:[#allocation2 + $0x58] sm:$0xff] }
  0x66   :  { %v101_v55 = vpack.c.bf16 %v94_v54, %v87_v53 }
  0x67   :  { %733 = vmatpush2.bf16.msra.mxu0 %v1609_v56  ;;  %v1682_v56 = vld [vmem:[#allocation7 + $0x70] ss:$8 sps:$4 sm:$0xff]  }
  0x68   :  { %734 = vmatprep.subr.bf16.mxu0 %v1613_v57  ;;  %776 = vmatpush2.bf16.msra.mxu1 %v1612_v58  ;;  %v1684_v57 = vld [vmem:[#allocation7 + $0x74] ss:$8 sps:$4 sm:$0xff]   ;;  %v1687_v58 = vld [vmem:[#allocation7 + $0x64] ss:$8 sps:$4 sm:$0xff]  }
  0x69   :  { %777 = vmatprep.subr.bf16.mxu1 %v1616_v59  ;;  %v1685_v59 = vld [vmem:[#allocation7 + $0x60] ss:$8 sps:$4 sm:$0xff]  }
  0x6b   :  { %735 = vmatpush2.bf16.msra.mxu0 %v1615_v60  ;;  %v1690_v60 = vld [vmem:[#allocation7 + $0x54] ss:$8 sps:$4 sm:$0xff]  }
  0x6c   :  { %736 = vmatprep.subr.bf16.mxu0 %v1619_v61  ;;  %778 = vmatpush2.bf16.msra.mxu1 %v1618_v62  ;;  %v1688_v61 = vld [vmem:[#allocation7 + $0x50] ss:$8 sps:$4 sm:$0xff]   ;;  %v1693_v62 = vld [vmem:[#allocation7 + $0x44] ss:$8 sps:$4 sm:$0xff]  }
  0x6d   :  { %779 = vmatprep.subr.bf16.mxu1 %v1622_v63  ;;  %v1691_v63 = vld [vmem:[#allocation7 + $0x40] ss:$8 sps:$4 sm:$0xff]  }
  0x6f   :  { %737 = vmatpush2.bf16.msra.mxu0 %v1621_v0  ;;  %v1696_v0 = vld [vmem:[#allocation7 + $0x34] ss:$8 sps:$4 sm:$0xff]  }
  0x70   :  { %738 = vmatprep.subr.bf16.mxu0 %v1625_v2  ;;  %780 = vmatpush2.bf16.msra.mxu1 %v1624_v1  ;;  %v1694_v1 = vld [vmem:[#allocation7 + $0x30] ss:$8 sps:$4 sm:$0xff]   ;;  %v1699_v2 = vld [vmem:[#allocation7 + $0x24] ss:$8 sps:$4 sm:$0xff]  }
  0x71   :  { %781 = vmatprep.subr.bf16.mxu1 %v1628_v4  ;;  %v1702_v4 = vld [vmem:[#allocation7 + $0x14] ss:$8 sps:$4 sm:$0xff]  }
  0x73   :  { %739 = vmatpush2.bf16.msra.mxu0 %v1627_v3  ;;  %v1697_v3 = vld [vmem:[#allocation7 + $0x20] ss:$8 sps:$4 sm:$0xff]  }
  0x74   :  { %794 = vmatprep.subr.bf16.mxu0 %v1633_v8  ;;  %782 = vmatpush2.bf16.msra.mxu1 %v1630_v6  ;;  %v1705_v6 = vld [vmem:[#allocation7 + $0x4] ss:$8 sps:$4 sm:$0xff]   ;;  %v1708_v8 = vld [vmem:[#allocation7 + $0xf4] ss:$8 sps:$4 sm:$0xff]  }
  0x75   :  { %851 = vmatprep.subr.bf16.mxu1 %v1678_v16  ;;  %v1720_v16 = vld [vmem:[#allocation7 + $0xb4] ss:$8 sps:$4 sm:$0xff]  }
  0x76   :  { %741 = vmatmul.mubr.bf16.vlgmr.msra.gmra.mxu0 %v97_v11  ;;  %v1709_v11 = vld [vmem:[#allocation7 + $0xe0] ss:$8 sps:$4 sm:$0xff]  }
  0x77   :  { %795 = vmatpush1.bf16.msra.mxu0 %v1631_v12  ;;  %784 = vmatmul.mubr.bf16.vlgmr.msra.gmra.mxu1 %v99_v13  ;;  %v1714_v12 = vld [vmem:[#allocation7 + $0xd4] ss:$8 sps:$4 sm:$0xff]   ;;  %v1712_v13 = vld [vmem:[#allocation7 + $0xd0] ss:$8 sps:$4 sm:$0xff]  }
  0x78   :  { %796 = vmatprep.subr.bf16.mxu0 %v1636_v14  ;;  %869 = vmatprep.mubr.bf16.mxu1 %v1864_v21  ;;  %v1717_v14 = vld [vmem:[#allocation7 + $0xc4] ss:$8 sps:$4 sm:$0xff]   ;;  %v1724_v21 = vld [vmem:[#allocation7 + $0x90] ss:$8 sps:$4 sm:$0xff]  }
  0x79   :  { %852 = vmatpush1.bf16.msra.mxu1 %v1676_v15  ;;  %826 = vmatprep.mubr.bf16.mxu0 %v102_v26  ;;  %v1715_v15 = vld [vmem:[#allocation7 + $0xc0] ss:$8 sps:$4 sm:$0xff]   ;;  %v1732_v26 = vld [vmem:[#allocation8 + $0x70] sm:$0xff]  }
  0x7a   :  { %1090 = vmatprep.subr.bf16.mxu1 %v1684_v57 }
  0x7b   :  { %797 = vmatpush1.bf16.msra.mxu0 %v1634_v17  ;;  %v1718_v17 = vld [vmem:[#allocation7 + $0xb0] ss:$8 sps:$4 sm:$0xff]  }
  0x7c   :  { %798 = vmatprep.subr.bf16.mxu0 %v1639_v18  ;;  %v1723_v18 = vld [vmem:[#allocation7 + $0xa4] ss:$8 sps:$4 sm:$0xff]  }
  0x7f   :  { %799 = vmatpush1.bf16.msra.mxu0 %v1637_v20  ;;  %1442 = vmatmul.mubr.msk.bf16.vlgmr.msra.gmra.mxu1 %vm704_vm0, %v103_v27  ;;  %v1726_v20 = vld [vmem:[#allocation7 + $0x94] ss:$8 sps:$4 sm:$0xff]  }
  0x80   :  { %800 = vmatprep.subr.bf16.mxu0 %v1642_v25  ;;  %1091 = vmatpush1.bf16.msra.mxu1 %v1682_v56  ;;  %v1731_v25 = vld [vmem:[#allocation8 + $0x38] sm:$0xff]   ;;  %v1733_v27 = vld [vmem:[#allocation8 + $0x30] sm:$0xff]  }
  0x81   :  { %1092 = vmatprep.subr.bf16.mxu1 %v1687_v58 }
  0x83   :  { %801 = vmatpush1.bf16.msra.mxu0 %v1640_v28  ;;  %v1734_v28 = vld [vmem:[#allocation8 + $0x68] sm:$0xff]  }
  0x84   :  { %802 = vmatprep.subr.bf16.mxu0 %v1645_v29  ;;  %1093 = vmatpush1.bf16.msra.mxu1 %v1685_v59  ;;  %v1735_v29 = vld [vmem:[#allocation8 + $0x28] sm:$0xff]  }
  0x85   :  { %1094 = vmatprep.subr.bf16.mxu1 %v1690_v60 }
  0x87   :  { %803 = vmatpush1.bf16.msra.mxu0 %v1643_v30  ;;  %v1736_v30 = vld [vmem:[#allocation8 + $0x60] sm:$0xff]  }
  0x88   :  { %804 = vmatprep.subr.bf16.mxu0 %v1648_v31  ;;  %1095 = vmatpush1.bf16.msra.mxu1 %v1688_v61  ;;  %v1737_v31 = vld [vmem:[#allocation8 + $0x20] sm:$0xff]  }
  0x89   :  { %1096 = vmatprep.subr.bf16.mxu1 %v1693_v62 }
  0x8b   :  { %805 = vmatpush1.bf16.msra.mxu0 %v1646_v32  ;;  %v1738_v32 = vld [vmem:[#allocation8 + $0x58] sm:$0xff]  }
  0x8c   :  { %806 = vmatprep.subr.bf16.mxu0 %v1651_v33  ;;  %1097 = vmatpush1.bf16.msra.mxu1 %v1691_v63  ;;  %v1739_v33 = vld [vmem:[#allocation8 + $0x18] sm:$0xff]  }
  0x8d   :  { %1098 = vmatprep.subr.bf16.mxu1 %v1696_v0 }
  0x8f   :  { %807 = vmatpush1.bf16.msra.mxu0 %v1649_v34  ;;  %v204_v34 = vlaneseq }
  0x90   :  { %808 = vmatprep.subr.bf16.mxu0 %v1654_v35  ;;  %1099 = vmatpush1.bf16.msra.mxu1 %v1694_v1 }
  0x91   :  { %1100 = vmatprep.subr.bf16.mxu1 %v1699_v2 }
  0x93   :  { %809 = vmatpush1.bf16.msra.mxu0 %v1652_v36  ;;  %v205_v36 = vshrl.u32 %v204_v34, 7 }
  0x94   :  { %810 = vmatprep.subr.bf16.mxu0 %v1657_v37  ;;  %1101 = vmatpush1.bf16.msra.mxu1 %v1697_v3 }
  0x95   :  { %1102 = vmatprep.subr.bf16.mxu1 %v1702_v4 }
  0x97   :  { %811 = vmatpush2.bf16.msra.mxu0 %v1655_v38 }
  0x98   :  { %812 = vmatprep.subr.bf16.mxu0 %v1660_v39  ;;  %1103 = vmatpush1.bf16.msra.mxu1 %v1700_v5  ;;  %v210_v39 = vsub.s32 1, %v205_v36 }
  0x99   :  { %1104 = vmatprep.subr.bf16.mxu1 %v1705_v6 }
  0x9b   :  { %813 = vmatpush2.bf16.msra.mxu0 %v1658_v40  ;;  %v202_v40 = vld [vmem:[%s1944_s2] sm:$0x3] }
  0x9c   :  { %814 = vmatprep.subr.bf16.mxu0 %v1663_v41  ;;  %1105 = vmatpush1.bf16.msra.mxu1 %v1703_v7  ;;  %v206_v41 = vsub.s32 0, %v205_v36 }
  0x9d   :  { %1106 = vmatprep.subr.bf16.mxu1 %v1708_v8 }
  0x9f   :  { %815 = vmatpush2.bf16.msra.mxu0 %v1661_v42 }
  0xa0   :  { %816 = vmatprep.subr.bf16.mxu0 %v1666_v43  ;;  %1107 = vmatpush2.bf16.msra.mxu1 %v1706_v9 }
  0xa1   :  { %1108 = vmatprep.subr.bf16.mxu1 %v1711_v10 }
  0xa3   :  { %817 = vmatpush2.bf16.msra.mxu0 %v1664_v44  ;;  %v211_v44 = vrot.slane %v202_v40, %v210_v39 }
  0xa4   :  { %818 = vmatprep.subr.bf16.mxu0 %v1669_v45  ;;  %1109 = vmatpush2.bf16.msra.mxu1 %v1709_v11  ;;  %v207_v45 = vrot.slane %v202_v40, %v206_v41 }
  0xa5   :  { %1110 = vmatprep.subr.bf16.mxu1 %v1714_v12 }
  0xa7   :  { %819 = vmatpush2.bf16.msra.mxu0 %v1667_v46 }
  0xa8   :  { %820 = vmatprep.subr.bf16.mxu0 %v1672_v47  ;;  %1111 = vmatpush2.bf16.msra.mxu1 %v1712_v13 }
  0xa9   :  { %1112 = vmatprep.subr.bf16.mxu1 %v1717_v14 }
  0xab   :  { %821 = vmatpush2.bf16.msra.mxu0 %v1670_v48 }
  0xac   :  { %822 = vmatprep.subr.bf16.mxu0 %v1675_v49  ;;  %1113 = vmatpush2.bf16.msra.mxu1 %v1715_v15  ;;  %v1740_v15 = vld [vmem:[#allocation8 + $0x50] sm:$0xff]  }
  0xad   :  { %1114 = vmatprep.subr.bf16.mxu1 %v1720_v16  ;;  %v1741_v16 = vld [vmem:[#allocation8 + $0x10] sm:$0xff]  }
  0xaf   :  { %823 = vmatpush2.bf16.msra.mxu0 %v1673_v50 }
  0xb0   :  { %824 = vmatprep.subr.bf16.mxu0 %v1681_v51  ;;  %1115 = vmatpush2.bf16.msra.mxu1 %v1718_v17  ;;  %v1742_v17 = vld [vmem:[#allocation8 + $0x48] sm:$0xff]  }
  0xb1   :  { %1116 = vmatprep.subr.bf16.mxu1 %v1723_v18  ;;  %v1743_v18 = vld [vmem:[#allocation8 + $0x8] sm:$0xff]  }
  0xb3   :  { %825 = vmatpush2.bf16.msra.mxu0 %v1679_v52 }
  0xb4   :  { %1117 = vmatpush2.bf16.msra.mxu1 %v1721_v19  ;;  %1501 = vmatprep.subr.bf16.mxu0 %v1730_v24  ;;  %v1744_v19 = vld [vmem:[#allocation8 + $0x40] sm:$0xff]  }
  0xb5   :  { %1118 = vmatprep.subr.bf16.mxu1 %v1726_v20  ;;  %v1745_v20 = vld [vmem:[#allocation8] sm:$0xff]  }
  0xb6   :  { %827 = vmatmul.mubr.bf16.vlgmr.msra.gmra.mxu0 %v101_v55 }
  0xb7   :  { %1502 = vmatpush3.bf16.msra.mxu0 %v1731_v25 }
  0xb8   :  { %1119 = vmatpush2.bf16.msra.mxu1 %v1724_v21  ;;  %1503 = vmatprep.subr.bf16.mxu0 %v1732_v26  ;;  %v918_v21 = vld [vmem:[%s1946_s4] sm:$0x3] }
  0xb9   :  { %1120 = vmatprep.subr.bf16.mxu1 %v1729_v22  ;;  %v923_v24 = vrot.slane %v918_v21, %v206_v41  ;;  %v1475_v41 = vld [vmem:[%s1948_s6] ss:$0 sm:$0xff] }
  0xbb   :  { %1504 = vmatpush3.bf16.msra.mxu0 %v1733_v27 }
  0xbc   :  { %1121 = vmatpush2.bf16.msra.mxu1 %v1727_v23  ;;  %1505 = vmatprep.subr.bf16.mxu0 %v1734_v28  ;;  %v927_v23 = vrot.slane %v918_v21, %v210_v39 }
  0xbf   :  { %1506 = vmatpush3.bf16.msra.mxu0 %v1735_v29 }
  0xc0   :  { %1507 = vmatprep.subr.bf16.mxu0 %v1736_v30 }
  0xc3   :  { %1508 = vmatpush3.bf16.msra.mxu0 %v1737_v31 }
  0xc4   :  { %1509 = vmatprep.subr.bf16.mxu0 %v1738_v32 }
  0xc7   :  { %1510 = vmatpush3.bf16.msra.mxu0 %v1739_v33 }
  0xc8   :  { %1511 = vmatprep.subr.bf16.mxu0 %v1740_v15 }
  0xcb   :  { %1512 = vmatpush3.bf16.msra.mxu0 %v1741_v16 }
  0xcc   :  { %1513 = vmatprep.subr.bf16.mxu0 %v1742_v17 }
  0xcf   :  { %1514 = vmatpush3.bf16.msra.mxu0 %v1743_v18 }
  0xd0   :  { %1515 = vmatprep.subr.bf16.mxu0 %v1744_v19 }
  0xd3   :  { %1516 = vmatpush3.bf16.msra.mxu0 %v1745_v20 }
 0x136   :  { %v742_v37 = vpop.f32.mrf.mxu0 }
 0x137   :  { %v785_v35 = vpop.f32.mrf.mxu1  ;;  %v743_v50 = vadd.f32 %v742_v37, %v207_v45 }
 0x138   :  { %v744_v42 = vpop.f32.mrf.mxu0 }
 0x139   :  { %v787_v38 = vpop.f32.mrf.mxu1  ;;  %v745_v49 = vadd.f32 %v744_v42, %v211_v44  ;;  %v786_v57 = vadd.f32 %v785_v35, %v743_v50 }
 0x13a   :  { %v746_v46 = vpop.f32.mrf.mxu0 }
 0x13b   :  { %v789_v43 = vpop.f32.mrf.mxu1  ;;  %v747_v52 = vadd.f32 %v746_v46, %v207_v45  ;;  %v788_v55 = vadd.f32 %v787_v38, %v745_v49 }
 0x13c   :  { %v748_v51 = vpop.f32.mrf.mxu0 }
 0x13d   :  { %v791_v47 = vpop.f32.mrf.mxu1  ;;  %v749_v56 = vadd.f32 %v748_v51, %v211_v44  ;;  %v790_v59 = vadd.f32 %v789_v43, %v747_v52 }
 0x13f   :  { %v871_v48 = vpop.f32.mrf.mxu1  ;;  %v792_v0 = vadd.f32 %v791_v47, %v749_v56 }
 0x141   :  { %v873_v53 = vpop.f32.mrf.mxu1 }
 0x143   :  { %v875_v62 = vpop.f32.mrf.mxu1 }
 0x145   :  { %v877_v7 = vpop.f32.mrf.mxu1 }
 0x176   :  { %v828_v54 = vpop.f32.mrf.mxu0 }
 0x177   :  { %v829_v61 = vadd.f32 %v828_v54, %v786_v57 }
 0x178   :  { %v830_v58 = vpop.f32.mrf.mxu0 }
 0x179   :  { %v831_v60 = vadd.f32 %v830_v58, %v788_v55  ;;  %v872_v6 = vadd.f32 %v871_v48, %v829_v61 }
 0x17a   :  { %v832_v63 = vpop.f32.mrf.mxu0 }
 0x17b   :  { %v833_v1 = vadd.f32 %v832_v63, %v790_v59  ;;  %v874_v3 = vadd.f32 %v873_v53, %v831_v60  ;;  %v880_v12 = vmax.f32 %v872_v6, 0.0 }
 0x17c   :  { %v834_v2 = vpop.f32.mrf.mxu0 }
 0x17d   :  { %v876_v4 = vadd.f32 %v875_v62, %v833_v1  ;;  %v835_v5 = vadd.f32 %v834_v2, %v792_v0  ;;  %v881_v10 = vmax.f32 %v874_v3, 0.0 }
 0x17f   :  { %v878_v8 = vadd.f32 %v877_v7, %v835_v5  ;;  %v882_v9 = vmax.f32 %v876_v4, 0.0 }
 0x181   :  { %v883_v11 = vmax.f32 %v878_v8, 0.0  ;;  %v884_v14 = vpack.c.bf16 %v882_v9, %v880_v12 }
 0x183   :  { %v885_v13 = vpack.c.bf16 %v883_v11, %v881_v10 }
 0x185   :  { %1122 = vmatprep.mubr.bf16.mxu1 %v885_v13 }
 0x186   :  { %1123 = vmatmul.mubr.bf16.vlgmr.msra.gmra.mxu1 %v884_v14 }
 0x246   :  { %v1124_v22 = vpop.f32.mrf.mxu1 }
 0x247   :  { %v1125_v29 = vadd.f32 %v1124_v22, %v923_v24 }
 0x248   :  { %v1126_v25 = vpop.f32.mrf.mxu1 }
 0x249   :  { %v1127_v27 = vadd.f32 %v1126_v25, %v927_v23  ;;  %v1133_v35 = vmax.f32 %v1125_v29, 0.0 }
 0x24a   :  { %v1128_v26 = vpop.f32.mrf.mxu1 }
 0x24b   :  { %v1129_v28 = vadd.f32 %v1128_v26, %v923_v24  ;;  %v1134_v33 = vmax.f32 %v1127_v27, 0.0 }
 0x24c   :  { %v1130_v30 = vpop.f32.mrf.mxu1 }
 0x24d   :  { %v1131_v31 = vadd.f32 %v1130_v30, %v927_v23  ;;  %v1135_v32 = vmax.f32 %v1129_v28, 0.0 }
 0x24f   :  { %v1136_v34 = vmax.f32 %v1131_v31, 0.0  ;;  %v1137_v37 = vpack.c.bf16 %v1135_v32, %v1133_v35 }
 0x251   :  { %v1138_v36 = vpack.c.bf16 %v1136_v34, %v1134_v33 }
 0x253   :  { %1306 = vmatprep.mubr.bf16.mxu0 %v1138_v36 }
 0x254   :  { %1307 = vmatmul.mubr.bf16.vlgmr.msra.gmra.mxu0 %v1137_v37 }
 0x314   :  { %v1517_v38 = vpop.f32.mrf.mxu0 }
 0x316   :  { %v1518_v40 = vpop.f32.mrf.mxu0 }
 0x317   :  { %v1519_v39 = vadd.f32 %v1518_v40, %v1517_v38 }
 0x318   :  { %v1520_v42 = vpop.f32.mrf.mxu0 }
 0x319   :  { %v1309_v45 = vadd.f32 %v1519_v39, %v1475_v41 }
 0x31a   :  { %v1521_v43 = vpop.f32.mrf.mxu0 }
 0x31b   :  { %v1522_v44 = vadd.f32 %v1521_v43, %v1520_v42 }
 0x31d   :  { %v1312_v46 = vadd.f32 %v1522_v44, %v1475_v41 }
 0x31f   :  { %v1499_v47 = vpack.c.bf16 %v1312_v46, %v1309_v45 }
 0x321   :  { %1500 = vst [vmem:[#allocation10] sm:$0xff] %v1499_v47  }
 0x322   :  { %1837 = shalt.err (!%p1834_p10)
}
 0x323   :  { %1336 = dma.vmem_to_hbm [thread:$0]  %s1331_s28, 128, %s1949_s7, [#allocation4], %s1862_s21, %s1862_s21, %s1863_s22  }
 0x324   :  { %1852 = dma.done.wait [#allocation4], 128  }
 0x325   :  { %1853 = vsyncadd [#allocation4], 4294967168 }
 0x326   :  { %1340 = vsyncpa [#allocation3], 1 }
 0x327   :  { %1341 = vsyncpa [#allocation6], 1 }
 0x328   :  { %1342 = vsyncpa [#allocation9], 1 }
 0x329   :  { %1343 = vsyncpa [#allocation4], 1 }

</bundles_post_ra>
